<compile_context>
chip_gen: v7x
topology: tpu7x:2x2x1
jax: 0.10.0
libtpu: 0.0.40
codegen_flags: <defaults>
</compile_context>

<pallas_src>
import jax
import jax.numpy as jnp
from jax.experimental import pallas as pl
from jax.experimental.pallas import tpu as pltpu


def _normalize_kernel(x_ref, mean_ref, inv_std_ref, o_ref):
    # x_ref / o_ref: (TM, TC) lane-dense VMEM tiles.
    # mean_ref / inv_std_ref: (TM, 1) per-row (= per-channel) params, f32.
    xf = x_ref[...].astype(jnp.float32)
    o_ref[...] = ((xf - mean_ref[...]) * inv_std_ref[...]).astype(o_ref.dtype)


def _round_down(v, m):
    return (v // m) * m


def _round_up(v, m):
    return -(-v // m) * m


def _choose_tiles(rows, cols, itemsize,
                  budget_bytes=4 << 20,          # ~4 MiB per block
                  multi_step_bytes=512 << 10):   # force >=2 grid steps above this
    """Pick (tm, tc) block dims for a (rows, cols) lane-dense array.

    * tc is the full column extent when a pack-row slab fits the budget,
      otherwise the largest multiple of 128 under budget (keeps unmasked vst).
    * tm is a multiple of the sublane pack factor (8 f32 / 16 bf16 / 32 int8)
      or the full row extent; ragged tails are handled by cdiv + padding.
    * Arrays above `multi_step_bytes` get >= 2 row steps so load/compute/store
      overlap and v7x's second TensorCore is used.
    """
    pack = 8 * max(1, 4 // max(1, itemsize))
    total_bytes = rows * cols * itemsize

    # --- column tile (last dim: multiple of 128, or the full extent).
    if cols <= 128 or pack * cols * itemsize <= budget_bytes:
        tc = cols
    else:
        tc = max(128, _round_down(min(cols, budget_bytes // (pack * itemsize)), 128))

    # --- row tile (second-to-last dim: pack multiple, or the full extent).
    if rows <= pack:
        tm = rows
    else:
        tm_cap = max(pack, _round_down(budget_bytes // (tc * itemsize), pack))
        if total_bytes <= multi_step_bytes and rows * tc * itemsize <= budget_bytes:
            tm = rows                      # tiny array: a single grid step wins
        else:
            half_rows = _round_up((rows + 1) // 2, pack)   # >=2 balanced steps
            tm = min(tm_cap, half_rows)
    return tm, tc


def normalize(x, mean, std, *, donate=False):
    """Per-channel normalization, NCHW layout. x: (N, C, H, W)."""
    N, C, H, W = x.shape
    assert C == mean.shape[0] == std.shape[0]

    mean_f = mean.astype(jnp.float32)
    inv_std = 1.0 / std.astype(jnp.float32)

    # Lane-dense 2-D view: (N*C rows, H*W lanes). Row r maps to channel r % C.
    rows, cols = N * C, H * W
    x2 = x.reshape(rows, cols)
    mean_rows = jnp.tile(mean_f, N).reshape(rows, 1)
    inv_std_rows = jnp.tile(inv_std, N).reshape(rows, 1)

    itemsize = x.dtype.itemsize
    tm, tc = _choose_tiles(rows, cols, itemsize)
    grid = (pl.cdiv(rows, tm), pl.cdiv(cols, tc))

    # Deep-buffer the streaming input only when blocks are small AND the grid
    # is long (v5e: lowest HBM BW, exposed per-step input DMA). With the
    # 4 MiB budget this rarely triggers.
    block_bytes = tm * tc * itemsize
    if block_bytes <= (1 << 20) and grid[0] * grid[1] >= 4:
        x_spec = pl.BlockSpec((tm, tc), lambda i, j: (i, j),
                              pipeline_mode=pl.Buffered(3))
    else:
        x_spec = pl.BlockSpec((tm, tc), lambda i, j: (i, j))

    alias_kwargs = {"input_output_aliases": {0: 0}} if donate else {}

    out2 = pl.pallas_call(
        _normalize_kernel,
        out_shape=jax.ShapeDtypeStruct((rows, cols), x.dtype),
        grid_spec=pl.GridSpec(
            grid=grid,
            in_specs=[
                x_spec,
                pl.BlockSpec((tm, 1), lambda i, j: (i, 0)),
                pl.BlockSpec((tm, 1), lambda i, j: (i, 0)),
            ],
            out_specs=pl.BlockSpec((tm, tc), lambda i, j: (i, j)),
        ),
        compiler_params=pltpu.CompilerParams(
            dimension_semantics=("parallel", "parallel"),
            # 4 MiB blocks, double-buffered in+out ~= 16 MiB live. 32 MiB keeps
            # that legal on v5e's 16 MiB default scoped VMEM and leaves
            # headroom on v7x (64 MiB physical).
            vmem_limit_bytes=32 * 1024 * 1024,
        ),
        **alias_kwargs,
    )(x2, mean_rows, inv_std_rows)

    return out2.reshape(N, C, H, W)


def normalize_module_forward(x, mean, std):
    """Equivalent of Normalize.forward with the wrapped model = identity."""
    x_norm = normalize(x, mean, std)
    return x_norm  # model(x_norm) would go here


if __name__ == "__main__":
    # CIFAR-10 statistics (from the module's __init__), deterministic.
    mean = jnp.array([0.4914, 0.4822, 0.4465], dtype=jnp.float32)
    std = jnp.array([0.2023, 0.1994, 0.2010], dtype=jnp.float32)

    key0, key1 = jax.random.split(jax.random.PRNGKey(0))

    # Primary small NCHW input (module is 3-channel): batch=2, 16x16.
    x = jax.random.uniform(key0, (2, 3, 16, 16), dtype=jnp.float32)
    out = jax.block_until_ready(normalize_module_forward(x, mean, std))
    ref = (x - mean.reshape(1, 3, 1, 1)) / std.reshape(1, 3, 1, 1)
    assert out.shape == x.shape and out.dtype == x.dtype
    assert jnp.allclose(out, ref, atol=1e-5, rtol=1e-5)

    # Second shape exercising the multi-step, ragged row tiling
    # (rows = 30 -> tm = 16, grid = (2, 1), padded tail block).
    xb = jax.random.uniform(key1, (10, 3, 96, 96), dtype=jnp.float32)
    outb = jax.block_until_ready(normalize_module_forward(xb, mean, std))
    refb = (xb - mean.reshape(1, 3, 1, 1)) / std.reshape(1, 3, 1, 1)
    assert outb.shape == xb.shape and outb.dtype == xb.dtype
    assert jnp.allclose(outb, refb, atol=1e-5, rtol=1e-5)

    print("KERNEL_OK")
</pallas_src>

<mosaic_0001>
module attributes {stable_mosaic.version = 11 : i64} {
  func.func @_normalize_kernel(%arg0: i32, %arg1: i32, %arg2: memref<6x256xf32, #tpu.memory_space<vmem>>, %arg3: memref<6x1xf32, #tpu.memory_space<vmem>>, %arg4: memref<6x1xf32, #tpu.memory_space<vmem>>, %arg5: memref<6x256xf32, #tpu.memory_space<vmem>>) attributes {dimension_semantics = [#tpu.dimension_semantics<parallel>, #tpu.dimension_semantics<parallel>], iteration_bounds = array<i64: 1, 1>, scalar_prefetch = 0 : i64, scratch_operands = 0 : i64, tpu.core_type = #tpu.core_type<tc>, window_params = [{transform_indices = @transform_0, window_bounds = array<i64: 6, 256>}, {transform_indices = @transform_1, window_bounds = array<i64: 6, 1>}, {transform_indices = @transform_2, window_bounds = array<i64: 6, 1>}, {transform_indices = @transform_3, window_bounds = array<i64: 6, 256>}]} {
    %c0 = arith.constant 0 : index
    %c0_0 = arith.constant 0 : index
    %0 = vector.load %arg2[%c0, %c0_0] : memref<6x256xf32, #tpu.memory_space<vmem>>, vector<6x256xf32>
    %c0_1 = arith.constant 0 : index
    %c0_2 = arith.constant 0 : index
    %1 = vector.load %arg3[%c0_1, %c0_2] : memref<6x1xf32, #tpu.memory_space<vmem>>, vector<6x1xf32>
    %2 = vector.broadcast %1 : vector<6x1xf32> to vector<6x256xf32>
    %3 = arith.subf %0, %2 : vector<6x256xf32>
    %c0_3 = arith.constant 0 : index
    %c0_4 = arith.constant 0 : index
    %4 = vector.load %arg4[%c0_3, %c0_4] : memref<6x1xf32, #tpu.memory_space<vmem>>, vector<6x1xf32>
    %5 = vector.broadcast %4 : vector<6x1xf32> to vector<6x256xf32>
    %6 = arith.mulf %3, %5 : vector<6x256xf32>
    %c0_5 = arith.constant 0 : index
    %c0_6 = arith.constant 0 : index
    %7 = vector.load %arg5[%c0_5, %c0_6] : memref<6x256xf32, #tpu.memory_space<vmem>>, vector<6x256xf32>
    tpu.vector_store %arg5[%c0_5, %c0_6], %6 {strides = array<i32>} : memref<6x256xf32, #tpu.memory_space<vmem>>, vector<6x256xf32>,
    return
  }
  func.func @transform_0(%arg0: i32, %arg1: i32) -> (i32, i32) {
    %c0_i32 = arith.constant 0 : i32
    return %arg0, %arg1 : i32, i32
  }
  func.func @transform_1(%arg0: i32, %arg1: i32) -> (i32, i32) {
    %c0_i32 = arith.constant 0 : i32
    %c0_i32_0 = arith.constant 0 : i32
    return %arg0, %c0_i32 : i32, i32
  }
  func.func @transform_2(%arg0: i32, %arg1: i32) -> (i32, i32) {
    %c0_i32 = arith.constant 0 : i32
    %c0_i32_0 = arith.constant 0 : i32
    return %arg0, %c0_i32 : i32, i32
  }
  func.func @transform_3(%arg0: i32, %arg1: i32) -> (i32, i32) {
    %c0_i32 = arith.constant 0 : i32
    return %arg0, %arg1 : i32, i32
  }
}

</mosaic_0001>

<bundles_post_ra>
// kernel: tpu_custom_call.1
= control target key start
LH: loop header
LB: loop body
LE: loop exit
PB: predicated region body
PF: predicated region fallthrough
CT: control target
= control target key end

     0   :  { %v76_v1 = vmov 0   ;;  %s122_s0 = inlined_call_operand.vmem [shape: f32[6,256], index: 0, kind: input, shape index: {}]   ;;  %s123_s1 = inlined_call_operand.vmem [shape: f32[6,1], index: 1, kind: input, shape index: {}]   ;;  %s124_s2 = inlined_call_operand.vmem [shape: f32[6,1], index: 2, kind: input, shape index: {}]   ;;  %s125_s3 = inlined_call_operand.hbm [shape: f32[6,256], index: 3, kind: output, shape index: {}]  }
   0x1   :  { %v17_v0 = vld [vmem:[%s123_s1] sm:$0x3f]  ;;  %51 = vset.pattern.permute.xlu0 %v76_v1 }
   0x2   :  { %8 = vsyncpa [#allocation3], 0  ;;  %20 = vperm.xlu0 %51, %v17_v0   ;;  %v25_v2 = vld [vmem:[%s124_s2] sm:$0x3f]  ;;  %v16_v5 = vld [vmem:[%s122_s0 + $0x8] sm:$0x3f] }
   0x3   :  { %v15_v4 = vld [vmem:[%s122_s0] sm:$0x3f]  ;;  %s77_s20 = smov [#allocation2]  }
   0x4   :  { %s41_s1 = sshll.u32 %s77_s20, 4  ;;  %s42_s1 = int_to_ptr.vmem [resolvable:$true] %s41_s1 }
   0x5   :  { %s52_s2 = scalar_lea.vmem %s42_s1, 256  ;;  %p57_p1 = scmp.lt.s32.totalorder %s42_s1, %s42_s1 }
   0x6   :  { %28 = vperm.xlu0 %51, %v25_v2   ;;  %p53_p0 = scmp.ne.s32.totalorder %s42_s1, %s52_s2  ;;  %p58_p2 = scmp.lt.s32.totalorder %s52_s2, %s52_s2 }
   0x8   :  { %p59_p3 = por %p58_p2, %p57_p1 }
   0xa   :  { %p60_p4 = pnand %p59_p3, %p53_p0 }
  0x81   :  { %v21_v3 = vpop.permute.xlu0 %20 }
  0x82   :  { %v23_v6 = vsub.f32 %v15_v4, %v21_v3  ;;  %v24_v7 = vsub.f32 %v16_v5, %v21_v3 }
  0x85   :  { %v29_v8 = vpop.permute.xlu0 %28 }
  0x86   :  { %v31_v9 = vmul.f32 %v29_v8, %v23_v6  ;;  %v32_v10 = vmul.f32 %v29_v8, %v24_v7 }
  0x88   :  { %33 = vst [vmem:[#allocation2] sm:$0x3f] %v31_v9  ;;  %34 = vst [vmem:[#allocation2 + $0x8] sm:$0x3f] %v32_v10 }
  0x89   :  { %63 = shalt.err (!%p60_p4)
}
  0x8a   :  { %s64_s0 = scalar_lea.hbm %s125_s3, 256 }
  0x8b   :  { %p65_p5 = scmp.ne.s32.totalorder %s125_s3, %s64_s0  ;;  %p68_p6 = scmp.lt.u32.totalorder %s64_s0, %s125_s3 }
  0x8d   :  { %p70_p7 = pnand %p68_p6, %p65_p5 }
  0x8f   :  { %73 = shalt.err (!%p70_p7)
}
  0x90   :  { %44 = dma.vmem_to_hbm [thread:$0]  %s42_s1, 256, %s125_s3, [#allocation3]  }
  0x91   :  { %74 = dma.done.wait [#allocation3], 256  }
  0x92   :  { %75 = vsyncadd [#allocation3], 4294967040 }
  0x93   :  { %48 = vsyncpa [#allocation3], 1 }

</bundles_post_ra>
